<compile_context>
chip_gen: v7x
topology: tpu7x:2x2x1
jax: 0.10.0
libtpu: 0.0.40
codegen_flags: <defaults>
</compile_context>

<pallas_src>
import jax
import jax.numpy as jnp
from jax.experimental import pallas as pl
from jax.experimental.pallas import tpu as pltpu


def fused_head_kernel(x_ref,    # VMEM (2, TB, 128)  stacked [gnn, tabular] activations
                      w_ref,    # VMEM (3, 128, 128) stacked [W1, W2, W3] (zero padded)
                      bg_ref,   # VMEM (4, 128)      rows: b1, b2, b3, gate broadcast
                      out_ref): # VMEM (TB, 128)     padded logits (lanes 0..1 valid)
    bg = bg_ref[...]                       # (4, 128)
    gate = bg[3:4, :]                      # (1, 128) -- gate scalar in every lane

    gnn = x_ref[0]                         # (TB, 128)
    tab = x_ref[1]                         # (TB, 128)
    x = tab + gate * (gnn - tab)           # == w*gnn + (1-w)*tab

    # f1 -> (dropout = identity at inference) -> relu
    h = jnp.dot(x, w_ref[0], preferred_element_type=jnp.float32) + bg[0:1, :]
    h = jnp.maximum(h, 0.0)

    # f2 -> relu
    h = jnp.dot(h, w_ref[1], preferred_element_type=jnp.float32) + bg[1:2, :]
    h = jnp.maximum(h, 0.0)

    # f3 (logits, no activation); padded lanes stay exactly 0
    out = jnp.dot(h, w_ref[2], preferred_element_type=jnp.float32) + bg[2:3, :]
    out_ref[...] = out.astype(out_ref.dtype)


def fused_head(gnn_x, tabular_x, params, *, batch_block=256):
    """Runs the fusion head as a single (batch-gridded) Pallas kernel."""
    B, in_dim = gnn_x.shape
    F1 = params["w1"].shape[1]
    out_dim = params["w3"].shape[1]
    FP = 128  # lane-aligned padded feature width
    assert in_dim <= FP and F1 <= FP and out_dim <= FP

    # Batch tiling: sublane-aligned; 256-row blocks once the batch is large.
    if B >= batch_block:
        TB = batch_block
    else:
        TB = max(8, ((B + 7) // 8) * 8)
    Bp = ((B + TB - 1) // TB) * TB
    nb = Bp // TB

    f32 = jnp.float32
    pad2 = lambda a, r, c: jnp.pad(a.astype(f32),
                                   ((0, r - a.shape[0]), (0, c - a.shape[1])))
    pad1 = lambda v: jnp.pad(v.astype(f32), (0, FP - v.shape[0]))

    # Lane-dense, stacked activations: one DMA instead of two narrow ones.
    x_stack = jnp.stack([pad2(gnn_x, Bp, FP), pad2(tabular_x, Bp, FP)], axis=0)

    # All weights zero-padded to (128, 128) and stacked: one resident DMA.
    w_stack = jnp.stack([pad2(params["w1"], FP, FP),
                         pad2(params["w2"], FP, FP),
                         pad2(params["w3"], FP, FP)], axis=0)

    # Biases + broadcast gate scalar packed into one small table.
    gate_row = jnp.full((FP,), params["weight"].astype(f32)[0])
    bg_stack = jnp.stack([pad1(params["b1"]), pad1(params["b2"]),
                          pad1(params["b3"]), gate_row], axis=0)

    out_p = pl.pallas_call(
        fused_head_kernel,
        out_shape=jax.ShapeDtypeStruct((Bp, FP), f32),
        grid=(nb,),
        in_specs=[
            pl.BlockSpec((2, TB, FP), lambda i: (0, i, 0)),   # activations (blocked over B)
            pl.BlockSpec((3, FP, FP), lambda i: (0, 0, 0)),   # weights (resident)
            pl.BlockSpec((4, FP),     lambda i: (0, 0)),      # biases + gate (resident)
        ],
        out_specs=pl.BlockSpec((TB, FP), lambda i: (i, 0)),
        compiler_params=pltpu.CompilerParams(dimension_semantics=("parallel",)),
    )(x_stack, w_stack, bg_stack)

    return out_p[:B, :out_dim]


def init_params(key, f1=70, in_dim=8, out_dim=2):
    """Deterministic init mimicking nn.Linear defaults (uniform +-1/sqrt(fan_in))."""
    ks = jax.random.split(key, 7)

    def lin(kw, kb, fan_in, fan_out):
        bound = 1.0 / jnp.sqrt(jnp.float32(fan_in))
        w = jax.random.uniform(kw, (fan_in, fan_out), jnp.float32, -bound, bound)
        b = jax.random.uniform(kb, (fan_out,), jnp.float32, -bound, bound)
        return w, b

    w1, b1 = lin(ks[0], ks[1], in_dim, f1)
    w2, b2 = lin(ks[2], ks[3], f1, f1)
    w3, b3 = lin(ks[4], ks[5], f1, out_dim)
    weight = jax.random.normal(ks[6], (1,), jnp.float32)   # nn.Parameter(torch.randn(1))
    return dict(w1=w1, b1=b1, w2=w2, b2=b2, w3=w3, b3=b3, weight=weight)


def reference_forward(gnn_x, tabular_x, params):
    """Pure-JAX reference of the same forward (sanity check)."""
    w = params["weight"][0]
    x = w * gnn_x + (1.0 - w) * tabular_x
    x = jnp.maximum(x @ params["w1"] + params["b1"], 0.0)
    x = jnp.maximum(x @ params["w2"] + params["b2"], 0.0)
    return x @ params["w3"] + params["b3"]


if __name__ == "__main__":
    key = jax.random.PRNGKey(0)
    k_p, k_g, k_t = jax.random.split(key, 3)

    B, IN_DIM, F1 = 8, 8, 70
    params = init_params(k_p, f1=F1, in_dim=IN_DIM)

    gnn_x = jax.random.normal(k_g, (B, IN_DIM), jnp.float32)       # output of q_gnnmodel
    tabular_x = jax.random.normal(k_t, (B, IN_DIM), jnp.float32)   # output of QuCrossModel

    out = fused_head(gnn_x, tabular_x, params)
    out = jax.block_until_ready(out)

    ref = reference_forward(gnn_x, tabular_x, params)
    assert out.shape == (B, 2)
    assert jnp.allclose(out, ref, atol=1e-4, rtol=1e-4), "mismatch vs pure-JAX reference"

    print("KERNEL_OK")
</pallas_src>

<mosaic_0001>
module attributes {stable_mosaic.version = 11 : i64} {
  func.func @fused_head_kernel(%arg0: i32, %arg1: memref<2x8x128xf32, #tpu.memory_space<vmem>>, %arg2: memref<3x128x128xf32, #tpu.memory_space<vmem>>, %arg3: memref<4x128xf32, #tpu.memory_space<vmem>>, %arg4: memref<8x128xf32, #tpu.memory_space<vmem>>) attributes {dimension_semantics = [#tpu.dimension_semantics<parallel>], iteration_bounds = array<i64: 1>, scalar_prefetch = 0 : i64, scratch_operands = 0 : i64, tpu.core_type = #tpu.core_type<tc>, window_params = [{transform_indices = @transform_0, window_bounds = array<i64: 2, 8, 128>}, {pipeline_mode = #tpu.pipeline_mode<synchronous>, transform_indices = @transform_1, window_bounds = array<i64: 3, 128, 128>}, {pipeline_mode = #tpu.pipeline_mode<synchronous>, transform_indices = @transform_2, window_bounds = array<i64: 4, 128>}, {transform_indices = @transform_3, window_bounds = array<i64: 8, 128>}]} {
    %c0 = arith.constant 0 : index
    %c0_0 = arith.constant 0 : index
    %0 = vector.load %arg3[%c0, %c0_0] : memref<4x128xf32, #tpu.memory_space<vmem>>, vector<4x128xf32>
    %1 = vector.extract_strided_slice %0 {offsets = [3, 0], sizes = [1, 128], strides = [1, 1]} : vector<4x128xf32> to vector<1x128xf32>
    %c0_1 = arith.constant 0 : index
    %c0_2 = arith.constant 0 : index
    %c0_3 = arith.constant 0 : index
    %2 = vector.load %arg1[%c0_1, %c0_2, %c0_3] : memref<2x8x128xf32, #tpu.memory_space<vmem>>, vector<1x8x128xf32>
    %3 = vector.shape_cast %2 : vector<1x8x128xf32> to vector<8x128xf32>
    %c1 = arith.constant 1 : index
    %c0_4 = arith.constant 0 : index
    %c0_5 = arith.constant 0 : index
    %4 = vector.load %arg1[%c1, %c0_4, %c0_5] : memref<2x8x128xf32, #tpu.memory_space<vmem>>, vector<1x8x128xf32>
    %5 = vector.shape_cast %4 : vector<1x8x128xf32> to vector<8x128xf32>
    %6 = arith.subf %3, %5 : vector<8x128xf32>
    %7 = vector.broadcast %1 : vector<1x128xf32> to vector<8x128xf32>
    %8 = arith.mulf %7, %6 : vector<8x128xf32>
    %9 = arith.addf %5, %8 : vector<8x128xf32>
    %c0_6 = arith.constant 0 : index
    %c0_7 = arith.constant 0 : index
    %c0_8 = arith.constant 0 : index
    %10 = vector.load %arg2[%c0_6, %c0_7, %c0_8] : memref<3x128x128xf32, #tpu.memory_space<vmem>>, vector<1x128x128xf32>
    %11 = vector.shape_cast %10 : vector<1x128x128xf32> to vector<128x128xf32>
    %cst = arith.constant dense<0.000000e+00> : vector<8x128xf32>
    %12 = tpu.matmul %9, %11, %cst {dimension_numbers = #tpu.dot_dimension_numbers<[1], [0], [0], [1], [0, 0, 1, 1], [], []>} : vector<8x128xf32>, vector<128x128xf32>, vector<8x128xf32> -> vector<8x128xf32>
    %13 = vector.extract_strided_slice %0 {offsets = [0, 0], sizes = [1, 128], strides = [1, 1]} : vector<4x128xf32> to vector<1x128xf32>
    %14 = vector.broadcast %13 : vector<1x128xf32> to vector<8x128xf32>
    %15 = arith.addf %12, %14 : vector<8x128xf32>
    %cst_9 = arith.constant 0.000000e+00 : f32
    %16 = vector.broadcast %cst_9 : f32 to vector<8x128xf32>
    %17 = arith.maximumf %15, %16 : vector<8x128xf32>
    %c1_10 = arith.constant 1 : index
    %c0_11 = arith.constant 0 : index
    %c0_12 = arith.constant 0 : index
    %18 = vector.load %arg2[%c1_10, %c0_11, %c0_12] : memref<3x128x128xf32, #tpu.memory_space<vmem>>, vector<1x128x128xf32>
    %19 = vector.shape_cast %18 : vector<1x128x128xf32> to vector<128x128xf32>
    %cst_13 = arith.constant dense<0.000000e+00> : vector<8x128xf32>
    %20 = tpu.matmul %17, %19, %cst_13 {dimension_numbers = #tpu.dot_dimension_numbers<[1], [0], [0], [1], [0, 0, 1, 1], [], []>} : vector<8x128xf32>, vector<128x128xf32>, vector<8x128xf32> -> vector<8x128xf32>
    %21 = vector.extract_strided_slice %0 {offsets = [1, 0], sizes = [1, 128], strides = [1, 1]} : vector<4x128xf32> to vector<1x128xf32>
    %22 = vector.broadcast %21 : vector<1x128xf32> to vector<8x128xf32>
    %23 = arith.addf %20, %22 : vector<8x128xf32>
    %cst_14 = arith.constant 0.000000e+00 : f32
    %24 = vector.broadcast %cst_14 : f32 to vector<8x128xf32>
    %25 = arith.maximumf %23, %24 : vector<8x128xf32>
    %c2 = arith.constant 2 : index
    %c0_15 = arith.constant 0 : index
    %c0_16 = arith.constant 0 : index
    %26 = vector.load %arg2[%c2, %c0_15, %c0_16] : memref<3x128x128xf32, #tpu.memory_space<vmem>>, vector<1x128x128xf32>
    %27 = vector.shape_cast %26 : vector<1x128x128xf32> to vector<128x128xf32>
    %cst_17 = arith.constant dense<0.000000e+00> : vector<8x128xf32>
    %28 = tpu.matmul %25, %27, %cst_17 {dimension_numbers = #tpu.dot_dimension_numbers<[1], [0], [0], [1], [0, 0, 1, 1], [], []>} : vector<8x128xf32>, vector<128x128xf32>, vector<8x128xf32> -> vector<8x128xf32>
    %29 = vector.extract_strided_slice %0 {offsets = [2, 0], sizes = [1, 128], strides = [1, 1]} : vector<4x128xf32> to vector<1x128xf32>
    %30 = vector.broadcast %29 : vector<1x128xf32> to vector<8x128xf32>
    %31 = arith.addf %28, %30 : vector<8x128xf32>
    %c0_18 = arith.constant 0 : index
    %c0_19 = arith.constant 0 : index
    %32 = vector.load %arg4[%c0_18, %c0_19] : memref<8x128xf32, #tpu.memory_space<vmem>>, vector<8x128xf32>
    tpu.vector_store %arg4[%c0_18, %c0_19], %31 {strides = array<i32>} : memref<8x128xf32, #tpu.memory_space<vmem>>, vector<8x128xf32>,
    return
  }
  func.func @transform_0(%arg0: i32) -> (i32, i32, i32) {
    %c0_i32 = arith.constant 0 : i32
    %c0_i32_0 = arith.constant 0 : i32
    %c0_i32_1 = arith.constant 0 : i32
    return %c0_i32, %arg0, %c0_i32_0 : i32, i32, i32
  }
  func.func @transform_1(%arg0: i32) -> (i32, i32, i32) {
    %c0_i32 = arith.constant 0 : i32
    %c0_i32_0 = arith.constant 0 : i32
    %c0_i32_1 = arith.constant 0 : i32
    %c0_i32_2 = arith.constant 0 : i32
    return %c0_i32, %c0_i32_0, %c0_i32_1 : i32, i32, i32
  }
  func.func @transform_2(%arg0: i32) -> (i32, i32) {
    %c0_i32 = arith.constant 0 : i32
    %c0_i32_0 = arith.constant 0 : i32
    %c0_i32_1 = arith.constant 0 : i32
    return %c0_i32, %c0_i32_0 : i32, i32
  }
  func.func @transform_3(%arg0: i32) -> (i32, i32) {
    %c0_i32 = arith.constant 0 : i32
    %c0_i32_0 = arith.constant 0 : i32
    return %arg0, %c0_i32 : i32, i32
  }
}

</mosaic_0001>

<bundles_post_ra>
// kernel: tpu_custom_call.1
= control target key start
LH: loop header
LB: loop body
LE: loop exit
PB: predicated region body
PF: predicated region fallthrough
CT: control target
= control target key end

     0   :  { %8 = vsyncpa [#allocation3], 0  ;;  %s762_s0 = inlined_call_operand.hbm [shape: f32[2,8,128], index: 0, kind: input, shape index: {}]   ;;  %s763_s1 = inlined_call_operand.hbm [shape: f32[3,128,128], index: 1, kind: input, shape index: {}]   ;;  %s764_s2 = inlined_call_operand.vmem [shape: f32[4,128], index: 2, kind: input, shape index: {}]   ;;  %s765_s3 = inlined_call_operand.hbm [shape: f32[8,128], index: 3, kind: output, shape index: {}]  }
   0x1   :  { %9 = vsyncpa [#allocation6], 0 }
   0x2   :  { %10 = vsyncpa [#allocation4], 0  ;;  %s653_s12 = smov [#allocation2]   ;;  %s581_s16 = scalar_lea.hbm %s762_s0, 256 }
   0x3   :  { %s16_s13 = sshll.u32 %s653_s12, 4  ;;  %p582_p0 = scmp.ne.s32.totalorder %s762_s0, %s581_s16  ;;  %s17_s13 = int_to_ptr.vmem [resolvable:$true] %s16_s13 }
   0x4   :  { %p585_p1 = scmp.lt.u32.totalorder %s581_s16, %s762_s0 }
   0x6   :  { %p587_p2 = pnand %p585_p1, %p582_p0 }
   0x8   :  { %590 = shalt.err (!%p587_p2)
}
   0x9   :  { %s591_s21 = scalar_lea.vmem %s17_s13, 256  ;;  %p596_p4 = scmp.lt.s32.totalorder %s17_s13, %s17_s13 }
   0xa   :  { %p592_p3 = scmp.ne.s32.totalorder %s17_s13, %s591_s21  ;;  %p597_p5 = scmp.lt.s32.totalorder %s591_s21, %s591_s21 }
   0xc   :  { %p598_p6 = por %p597_p5, %p596_p4 }
   0xe   :  { %p599_p7 = pnand %p598_p6, %p592_p3 }
  0x10   :  { %602 = shalt.err (!%p599_p7)
}
  0x11   :  { %s654_s22 = smov 128   ;;  %s655_s23 = smov 8  }
  0x12   :  { %22 = dma.hbm_to_vmem [thread:$0]  %s762_s0, 256, %s17_s13, [#allocation3], %s654_s22, %s654_s22, %s655_s23  }
  0x13   :  { %s656_s26 = smov [#allocation5]   ;;  %s603_s30 = scalar_lea.hbm %s763_s1, 6144 }
  0x14   :  { %s28_s27 = sshll.u32 %s656_s26, 4  ;;  %p604_p8 = scmp.ne.s32.totalorder %s763_s1, %s603_s30  ;;  %s29_s27 = int_to_ptr.vmem [resolvable:$true] %s28_s27 }
  0x15   :  { %p607_p9 = scmp.lt.u32.totalorder %s603_s30, %s763_s1 }
  0x17   :  { %p609_p10 = pnand %p607_p9, %p604_p8 }
  0x19   :  { %612 = shalt.err (!%p609_p10)
}
  0x1a   :  { %s613_s8 = scalar_lea.vmem %s29_s27, 6144  ;;  %p618_p12 = scmp.lt.s32.totalorder %s29_s27, %s29_s27 }
  0x1b   :  { %p614_p11 = scmp.ne.s32.totalorder %s29_s27, %s613_s8  ;;  %p619_p13 = scmp.lt.s32.totalorder %s613_s8, %s613_s8 }
  0x1d   :  { %p620_p0 = por %p619_p13, %p618_p12 }
  0x1f   :  { %p621_p1 = pnand %p620_p0, %p614_p11 }
  0x21   :  { %624 = shalt.err (!%p621_p1)
}
  0x22   :  { %34 = dma.hbm_to_vmem [thread:$0]  %s763_s1, 6144, %s29_s27, [#allocation6], %s654_s22, %s654_s22, %s655_s23  }
  0x23   :  { %647 = dma.done.wait [#allocation3], 256  }
  0x24   :  { %648 = vsyncadd [#allocation3], 4294967040 }
  0x25   :  { %649 = dma.done.wait [#allocation6], 6144  }
  0x26   :  { %650 = vsyncadd [#allocation6], 4294961152  ;;  %v657_v0 = vmov 0.0|0.0   ;;  %vm658_vm0 = vmmov 0   ;;  %v659_v1 = vmov 0.0   ;;  %v54_v2 = vld [vmem:[#allocation5] sm:$0xff]  ;;  %v48_v19 = vlaneseq }
  0x27   :  { %501 = vmatprep.subr.bf16.mxu0 %v657_v0  ;;  %428 = vmatprep.mubr.msk.f32.mxu0 %vm658_vm0, %v659_v1  ;;  %v55_v3 = vld [vmem:[#allocation5 + $0x8] sm:$0xff]  ;;  %v56_v4 = vld [vmem:[#allocation5 + $0x10] sm:$0xff]  ;;  %v57_v6 = vld [vmem:[#allocation5 + $0x18] sm:$0xff] }
  0x28   :  { %525 = vmatprep.subr.bf16.mxu1 %v657_v0  ;;  %463 = vmatprep.mubr.msk.f32.mxu1 %vm658_vm0, %v659_v1  ;;  %v502_v5 = vpack.c.bf16 %v55_v3, %v54_v2  ;;  %v505_v7 = vpack.c.bf16 %v57_v6, %v56_v4  ;;  %v58_v8 = vld [vmem:[#allocation5 + $0x20] sm:$0xff]  ;;  %v59_v9 = vld [vmem:[#allocation5 + $0x28] sm:$0xff]  ;;  %v148_v14 = vld [vmem:[#allocation5 + $0x90] sm:$0xff]  ;;  %v715_v26 = vshrl.u32 %v48_v19, 7 }
  0x29   :  { %v146_v10 = vld [vmem:[#allocation5 + $0x80] sm:$0xff]  ;;  %v147_v11 = vld [vmem:[#allocation5 + $0x88] sm:$0xff]  ;;  %v508_v12 = vpack.c.bf16 %v59_v9, %v58_v8  ;;  %v149_v15 = vld [vmem:[#allocation5 + $0x98] sm:$0xff] }
  0x2a   :  { %503 = vmatpush3.bf16.msra.mxu0 %v502_v5  ;;  %v526_v13 = vpack.c.bf16 %v147_v11, %v146_v10  ;;  %v60_v16 = vld [vmem:[#allocation5 + $0x30] sm:$0xff]  ;;  %v61_v17 = vld [vmem:[#allocation5 + $0x38] sm:$0xff]  ;;  %v529_v18 = vpack.c.bf16 %v149_v15, %v148_v14  ;;  %v150_v20 = vld [vmem:[#allocation5 + $0xa0] sm:$0xff]  ;;  %v50_v33 = vsub.s32 3, %v715_v26 }
  0x2b   :  { %504 = vmatprep.subr.bf16.mxu0 %v657_v0  ;;  %v151_v21 = vld [vmem:[#allocation5 + $0xa8] sm:$0xff]  ;;  %v511_v22 = vpack.c.bf16 %v61_v17, %v60_v16  ;;  %v62_v23 = vld [vmem:[#allocation5 + $0x40] sm:$0xff]  ;;  %v152_v27 = vld [vmem:[#allocation5 + $0xb0] sm:$0xff] }
  0x2c   :  { %527 = vmatpush3.bf16.msra.mxu1 %v526_v13  ;;  %v63_v24 = vld [vmem:[#allocation5 + $0x48] sm:$0xff]  ;;  %v532_v25 = vpack.c.bf16 %v151_v21, %v150_v20  ;;  %v153_v28 = vld [vmem:[#allocation5 + $0xb8] sm:$0xff]  ;;  %v64_v30 = vld [vmem:[#allocation5 + $0x50] sm:$0xff] }
  0x2d   :  { %528 = vmatprep.subr.bf16.mxu1 %v657_v0  ;;  %v514_v29 = vpack.c.bf16 %v63_v24, %v62_v23  ;;  %v65_v31 = vld [vmem:[#allocation5 + $0x58] sm:$0xff]  ;;  %v535_v32 = vpack.c.bf16 %v153_v28, %v152_v27  ;;  %v154_v34 = vld [vmem:[#allocation5 + $0xc0] sm:$0xff]  ;;  %v155_v35 = vld [vmem:[#allocation5 + $0xc8] sm:$0xff]  ;;  %v164_v28 = vsub.s32 1, %v715_v26 }
  0x2e   :  { %506 = vmatpush3.bf16.msra.mxu0 %v505_v7  ;;  %v517_v36 = vpack.c.bf16 %v65_v31, %v64_v30  ;;  %v724_v37 = vld [vmem:[%s764_s2] sm:$0xf]  ;;  %v46_v39 = vld [vmem:[#allocation2 + $0x8] sm:$0xff]  ;;  %v66_v40 = vld [vmem:[#allocation5 + $0x60] sm:$0xff]  ;;  %v538_v42 = vpack.c.bf16 %v155_v35, %v154_v34  ;;  %s660_s2 = smov [#allocation7]  }
  0x2f   :  { %507 = vmatprep.subr.bf16.mxu0 %v657_v0  ;;  %v44_v38 = vld [vmem:[#allocation2] sm:$0xff]  ;;  %v67_v41 = vld [vmem:[#allocation5 + $0x68] sm:$0xff]  ;;  %v51_v44 = vrot.slane %v724_v37, %v50_v33  ;;  %v157_v46 = vld [vmem:[#allocation5 + $0xd8] sm:$0xff]  ;;  %v256_v33 = vsub.s32 2, %v715_v26  ;;  %s335_s11 = sshll.u32 %s660_s2, 4  ;;  %s336_s11 = int_to_ptr.vmem [resolvable:$true] %s335_s11 }
  0x30   :  { %530 = vmatpush3.bf16.msra.mxu1 %v529_v18  ;;  %v47_v43 = vsub.f32 %v44_v38, %v46_v39  ;;  %v156_v45 = vld [vmem:[#allocation5 + $0xd0] sm:$0xff]  ;;  %v520_v47 = vpack.c.bf16 %v67_v41, %v66_v40  ;;  %v69_v49 = vld [vmem:[#allocation5 + $0x78] sm:$0xff]  ;;  %v158_v52 = vld [vmem:[#allocation5 + $0xe0] sm:$0xff]  ;;  %v72_v18 = vsub.s32 0, %v715_v26  ;;  %s625_s12 = scalar_lea.vmem %s336_s11, 128  ;;  %p630_p3 = scmp.lt.s32.totalorder %s336_s11, %s336_s11 }
  0x31   :  { %531 = vmatprep.subr.bf16.mxu1 %v657_v0  ;;  %v68_v48 = vld [vmem:[#allocation5 + $0x70] sm:$0xff]  ;;  %v541_v50 = vpack.c.bf16 %v157_v46, %v156_v45  ;;  %v159_v53 = vld [vmem:[#allocation5 + $0xe8] sm:$0xff]  ;;  %v161_v58 = vld [vmem:[#allocation5 + $0xf8] sm:$0xff]  ;;  %v257_v34 = vrot.slane %v724_v37, %v256_v33  ;;  %p626_p2 = scmp.ne.s32.totalorder %s336_s11, %s625_s12  ;;  %p631_p4 = scmp.lt.s32.totalorder %s625_s12, %s625_s12 }
  0x32   :  { %509 = vmatpush3.bf16.msra.mxu0 %v508_v12  ;;  %v52_v51 = vmul.f32 %v51_v44, %v47_v43  ;;  %v523_v54 = vpack.c.bf16 %v69_v49, %v68_v48  ;;  %v544_v55 = vpack.c.bf16 %v159_v53, %v158_v52  ;;  %v160_v57 = vld [vmem:[#allocation5 + $0xf0] sm:$0xff]  ;;  %v238_v60 = vld [vmem:[#allocation5 + $0x100] sm:$0xff]  ;;  %v239_v61 = vld [vmem:[#allocation5 + $0x108] sm:$0xff]  ;;  %v73_v19 = vrot.slane %v724_v37, %v72_v18 }
  0x33   :  { %510 = vmatprep.subr.bf16.mxu0 %v657_v0  ;;  %v547_v59 = vpack.c.bf16 %v161_v58, %v160_v57  ;;  %v240_v62 = vld [vmem:[#allocation5 + $0x110] sm:$0xff]  ;;  %v550_v63 = vpack.c.bf16 %v239_v61, %v238_v60  ;;  %v241_v2 = vld [vmem:[#allocation5 + $0x118] sm:$0xff]  ;;  %v242_v4 = vld [vmem:[#allocation5 + $0x120] sm:$0xff]  ;;  %p632_p5 = por %p631_p4, %p630_p3 }
  0x34   :  { %533 = vmatpush3.bf16.msra.mxu1 %v532_v25  ;;  %v53_v56 = vadd.f32 %v52_v51, %v46_v39  ;;  %v553_v3 = vpack.c.bf16 %v241_v2, %v240_v62  ;;  %v243_v5 = vld [vmem:[#allocation5 + $0x128] sm:$0xff]  ;;  %v245_v7 = vld [vmem:[#allocation5 + $0x138] sm:$0xff]  ;;  %v246_v9 = vld [vmem:[#allocation5 + $0x140] sm:$0xff] }
  0x35   :  { %534 = vmatprep.subr.bf16.mxu1 %v657_v0  ;;  %v556_v6 = vpack.c.bf16 %v243_v5, %v242_v4  ;;  %v247_v10 = vld [vmem:[#allocation5 + $0x148] sm:$0xff]  ;;  %v248_v12 = vld [vmem:[#allocation5 + $0x150] sm:$0xff]  ;;  %v249_v13 = vld [vmem:[#allocation5 + $0x158] sm:$0xff]  ;;  %p633_p6 = pnand %p632_p5, %p626_p2 }
  0x36   :  { %512 = vmatpush3.bf16.msra.mxu0 %v511_v22  ;;  %v562_v11 = vpack.c.bf16 %v247_v10, %v246_v9  ;;  %v565_v14 = vpack.c.bf16 %v249_v13, %v248_v12  ;;  %v250_v15 = vld [vmem:[#allocation5 + $0x160] sm:$0xff]  ;;  %v251_v16 = vld [vmem:[#allocation5 + $0x168] sm:$0xff]  ;;  %v252_v24 = vld [vmem:[#allocation5 + $0x170] sm:$0xff] }
  0x37   :  { %513 = vmatprep.subr.bf16.mxu0 %v657_v0  ;;  %v568_v17 = vpack.c.bf16 %v251_v16, %v250_v15  ;;  %v253_v25 = vld [vmem:[#allocation5 + $0x178] sm:$0xff] }
  0x38   :  { %536 = vmatpush3.bf16.msra.mxu1 %v535_v32  ;;  %v571_v27 = vpack.c.bf16 %v253_v25, %v252_v24 }
  0x39   :  { %537 = vmatprep.subr.bf16.mxu1 %v657_v0 }
  0x3a   :  { %515 = vmatpush3.bf16.msra.mxu0 %v514_v29  ;;  %v165_v29 = vrot.slane %v724_v37, %v164_v28 }
  0x3b   :  { %516 = vmatprep.subr.bf16.mxu0 %v657_v0 }
  0x3c   :  { %539 = vmatpush3.bf16.msra.mxu1 %v538_v42 }
  0x3d   :  { %540 = vmatprep.subr.bf16.mxu1 %v657_v0 }
  0x3e   :  { %518 = vmatpush3.bf16.msra.mxu0 %v517_v36 }
  0x3f   :  { %519 = vmatprep.subr.bf16.mxu0 %v657_v0 }
  0x40   :  { %542 = vmatpush3.bf16.msra.mxu1 %v541_v50 }
  0x41   :  { %543 = vmatprep.subr.bf16.mxu1 %v657_v0 }
  0x42   :  { %521 = vmatpush3.bf16.msra.mxu0 %v520_v47 }
  0x43   :  { %522 = vmatprep.subr.bf16.mxu0 %v657_v0 }
  0x44   :  { %545 = vmatpush3.bf16.msra.mxu1 %v544_v55 }
  0x45   :  { %546 = vmatprep.subr.bf16.mxu1 %v657_v0 }
  0x46   :  { %524 = vmatpush3.bf16.msra.mxu0 %v523_v54 }
  0x47   :  { %549 = vmatprep.subr.bf16.mxu0 %v657_v0 }
  0x48   :  { %548 = vmatpush3.bf16.msra.mxu1 %v547_v59 }
  0x49   :  { %429 = vmatmul.mubr.f32.vlgmr.msra.gmra.mrb[0].mxu0 %v53_v56 }
  0x4a   :  { %498 = vmatprep.mubr.msk.f32.mxu0 %vm658_vm0, %v659_v1  ;;  %551 = vmatpush3.bf16.msra.mxu0 %v550_v63  ;;  %v244_v1 = vld [vmem:[#allocation5 + $0x130] sm:$0xff] }
  0x4b   :  { %552 = vmatprep.subr.bf16.mxu0 %v657_v0  ;;  %v559_v8 = vpack.c.bf16 %v245_v7, %v244_v1 }
  0x4e   :  { %554 = vmatpush3.bf16.msra.mxu0 %v553_v3 }
  0x4f   :  { %555 = vmatprep.subr.bf16.mxu0 %v657_v0 }
  0x52   :  { %557 = vmatpush3.bf16.msra.mxu0 %v556_v6 }
  0x53   :  { %558 = vmatprep.subr.bf16.mxu0 %v657_v0 }
  0x56   :  { %560 = vmatpush3.bf16.msra.mxu0 %v559_v8 }
  0x57   :  { %561 = vmatprep.subr.bf16.mxu0 %v657_v0 }
  0x5a   :  { %563 = vmatpush3.bf16.msra.mxu0 %v562_v11 }
  0x5b   :  { %564 = vmatprep.subr.bf16.mxu0 %v657_v0 }
  0x5e   :  { %566 = vmatpush3.bf16.msra.mxu0 %v565_v14 }
  0x5f   :  { %567 = vmatprep.subr.bf16.mxu0 %v657_v0 }
  0x62   :  { %569 = vmatpush3.bf16.msra.mxu0 %v568_v17 }
  0x63   :  { %570 = vmatprep.subr.bf16.mxu0 %v657_v0 }
  0x66   :  { %572 = vmatpush3.bf16.msra.mxu0 %v571_v27 }
 0x11c   :  { %v140_v20 = vpop.f32.mrb[0].mxu0 }
 0x11d   :  { %v141_v21 = vadd.f32 %v140_v20, %v73_v19  ;;  %v430_v22 = vpop.f32.mrb[1].mxu0 }
 0x11f   :  { %v144_v23 = vmax.f32 %v141_v21, 0.0 }
 0x121   :  { %464 = vmatmul.mubr.f32.vlgmr.msra.gmra.mrb[0].mxu1 %v144_v23 }
 0x1f4   :  { %v232_v30 = vpop.f32.mrb[0].mxu1 }
 0x1f5   :  { %v233_v31 = vadd.f32 %v232_v30, %v165_v29  ;;  %v465_v0 = vpop.f32.mrb[1].mxu1 }
 0x1f7   :  { %v236_v32 = vmax.f32 %v233_v31, 0.0 }
 0x1f9   :  { %499 = vmatmul.mubr.f32.vlgmr.msra.gmra.mrb[2].mxu0 %v236_v32 }
 0x2cc   :  { %v324_v35 = vpop.f32.mrb[2].mxu0 }
 0x2cd   :  { %v325_v36 = vadd.f32 %v324_v35, %v257_v34  ;;  %v500_v38 = vpop.f32.mrb[3].mxu0 }
 0x2cf   :  { %328 = vst [vmem:[#allocation7] sm:$0xff] %v325_v36 }
 0x2d0   :  { %636 = shalt.err (!%p633_p6)
}
 0x2d1   :  { %s637_s15 = scalar_lea.hbm %s765_s3, 128 }
 0x2d2   :  { %p638_p7 = scmp.ne.s32.totalorder %s765_s3, %s637_s15  ;;  %p641_p8 = scmp.lt.u32.totalorder %s637_s15, %s765_s3 }
 0x2d4   :  { %p643_p9 = pnand %p641_p8, %p638_p7 }
 0x2d6   :  { %646 = shalt.err (!%p643_p9)
}
 0x2d7   :  { %338 = dma.vmem_to_hbm [thread:$0]  %s336_s11, 128, %s765_s3, [#allocation4]  }
 0x2d8   :  { %651 = dma.done.wait [#allocation4], 128  }
 0x2d9   :  { %652 = vsyncadd [#allocation4], 4294967168 }
 0x2da   :  { %342 = vsyncpa [#allocation3], 1 }
 0x2db   :  { %343 = vsyncpa [#allocation6], 1 }
 0x2dc   :  { %344 = vsyncpa [#allocation4], 1 }

</bundles_post_ra>
